<compile_context>
chip_gen: v6e
topology: v6e:2x2x1
jax: 0.10.0
libtpu: 0.0.40
codegen_flags: <defaults>
</compile_context>

<pallas_src>
import jax
import jax.numpy as jnp
from jax.experimental import pallas as pl
from jax.experimental.pallas import tpu as pltpu


def _subcluster_attn_kernel(
    x_ref,      # (N, H)       residual / input
    wb_ref,     # (H+1, 4H)    rows 0..H-1 = [Wq|Wk|Wv|Wo] (in,out); row H = biases
    ln_ref,     # (2, S, 1, H) [gamma; beta] per-subcluster LayerNorm params
    mask_ref,   # (S, N, N)    additive attention masks (0 / -1e9)
    out_ref,    # (S, N, H)    stacked per-subcluster outputs
):
    N, H = x_ref.shape
    S = mask_ref.shape[0]

    x = x_ref[...].astype(jnp.float32)                       # (N, H)
    w = wb_ref[0:H, :].astype(jnp.float32)                   # (H, 4H)
    b = wb_ref[H:H + 1, :].astype(jnp.float32)               # (1, 4H)

    # One fused projection matmul for Q, K, V (+ unused Wo slice rides along).
    proj = jnp.dot(x, w, preferred_element_type=jnp.float32) + b   # (N, 4H)
    q = proj[:, 0 * H:1 * H]                                  # (N, H), incl. bq
    k = proj[:, 1 * H:2 * H]                                  # (N, H), incl. bk
    v = proj[:, 2 * H:3 * H]                                  # (N, H), incl. bv
    wo = w[:, 3 * H:4 * H]                                    # (H, H)
    bo = b[:, 3 * H:4 * H]                                    # (1, H)

    # Shared (subcluster-independent) attention scores, scaled by 1/sqrt(H).
    scale = H ** -0.5
    scores = jnp.dot(q * scale, k.T, preferred_element_type=jnp.float32)  # (N, N)

    # Batched masked softmax over all S subclusters at once (unnormalized).
    s3 = scores[None, :, :] + mask_ref[...].astype(jnp.float32)          # (S, N, N)
    m3 = jnp.max(s3, axis=-1, keepdims=True)
    p3 = jnp.exp(s3 - m3)

    # One fused context matmul for all subclusters: (S*N, N) @ (N, H).
    # Leading-dim-only reshape (minor dim unchanged, N = 8 sublane-aligned).
    p2 = p3.reshape(S * N, N)
    inv = pl.reciprocal(jnp.sum(p2, axis=-1, keepdims=True), approx=False)  # (S*N, 1)
    ctx = jnp.dot(p2, v, preferred_element_type=jnp.float32) * inv          # (S*N, H)

    # One fused output projection for all subclusters.
    o2 = jnp.dot(ctx, wo, preferred_element_type=jnp.float32) + bo          # (S*N, H)

    # Residual add + per-subcluster LayerNorm (eps = 1e-12).
    y = o2.reshape(S, N, H) + x[None, :, :]                                 # (S, N, H)
    mean = jnp.mean(y, axis=-1, keepdims=True)
    yc = y - mean
    var = jnp.mean(yc * yc, axis=-1, keepdims=True)
    norm = yc * jax.lax.rsqrt(var + 1e-12)
    gamma = ln_ref[0]                                                       # (S, 1, H)
    beta = ln_ref[1]                                                        # (S, 1, H)
    out_ref[...] = (norm * gamma + beta).astype(out_ref.dtype)


def parallel_subcluster_attention(x, params, masks):
    """x: (N, H), masks: (S, N, N) additive. Returns (S, N, H)."""
    N, H = x.shape
    S = masks.shape[0]

    # Host-side packing (free layout plumbing): 4 input DMAs instead of 12,
    # and the packed weight/bias slab is lane-dense (last dim 4H = 128).
    w_all = jnp.concatenate(
        [params["wq"], params["wk"], params["wv"], params["wo"]], axis=1)   # (H, 4H)
    b_all = jnp.concatenate(
        [params["bq"], params["bk"], params["bv"], params["bo"]]).reshape(1, 4 * H)
    wb = jnp.concatenate([w_all, b_all], axis=0)                            # (H+1, 4H)
    ln = jnp.stack([params["gamma"], params["beta"]]).reshape(2, S, 1, H)   # (2, S, 1, H)

    vmem = pl.BlockSpec(memory_space=pltpu.MemorySpace.VMEM)
    return pl.pallas_call(
        _subcluster_attn_kernel,
        out_shape=jax.ShapeDtypeStruct((S, N, H), x.dtype),
        in_specs=[vmem, vmem, vmem, vmem],
        out_specs=vmem,
    )(x, wb, ln, masks)


def _reference_forward(x, params, masks):
    """Pure-JAX reference mirroring the PyTorch module (eval mode)."""
    H = x.shape[1]
    q = x @ params["wq"] + params["bq"]
    k = x @ params["wk"] + params["bk"]
    v = x @ params["wv"] + params["bv"]
    scores = (q / H ** 0.5) @ k.T
    outs = []
    for s in range(masks.shape[0]):
        a = jax.nn.softmax(scores + masks[s], axis=-1)
        ctx = a @ v
        o = ctx @ params["wo"] + params["bo"]
        y = o + x
        mean = y.mean(-1, keepdims=True)
        var = ((y - mean) ** 2).mean(-1, keepdims=True)
        outs.append((y - mean) / jnp.sqrt(var + 1e-12) * params["gamma"][s]
                    + params["beta"][s])
    return jnp.stack(outs)


if __name__ == "__main__":
    N, H, S = 8, 32, 6   # stocks, hidden_size, n_subclusters

    key = jax.random.PRNGKey(0)
    keys = jax.random.split(key, 12)

    # Deterministic synthetic parameters (shapes per the module __init__).
    scale = 1.0 / (H ** 0.5)
    params = {
        "wq": jax.random.normal(keys[0], (H, H), jnp.float32) * scale,
        "wk": jax.random.normal(keys[1], (H, H), jnp.float32) * scale,
        "wv": jax.random.normal(keys[2], (H, H), jnp.float32) * scale,
        "wo": jax.random.normal(keys[3], (H, H), jnp.float32) * scale,
        "bq": jax.random.normal(keys[4], (H,), jnp.float32) * 0.01,
        "bk": jax.random.normal(keys[5], (H,), jnp.float32) * 0.01,
        "bv": jax.random.normal(keys[6], (H,), jnp.float32) * 0.01,
        "bo": jax.random.normal(keys[7], (H,), jnp.float32) * 0.01,
        # per-subcluster LayerNorm params
        "gamma": jnp.ones((S, H), jnp.float32)
                 + 0.05 * jax.random.normal(keys[8], (S, H), jnp.float32),
        "beta": 0.05 * jax.random.normal(keys[9], (S, H), jnp.float32),
    }

    # Inputs: hidden_rep (N, H) and additive attention masks (S, N, N).
    x = jax.random.normal(keys[10], (N, H), jnp.float32)
    allowed = jax.random.bernoulli(keys[11], 0.7, (S, N, N))
    # ensure each row attends to at least itself (avoid all -inf rows)
    eye = jnp.eye(N, dtype=bool)[None]
    allowed = jnp.logical_or(allowed, eye)
    masks = jnp.where(allowed, 0.0, -1e9).astype(jnp.float32)

    out = parallel_subcluster_attention(x, params, masks)
    out = jax.block_until_ready(out)

    ref = _reference_forward(x, params, masks)
    assert out.shape == (S, N, H)
    assert jnp.allclose(out, ref, atol=1e-4, rtol=1e-4), (
        f"max abs err = {jnp.max(jnp.abs(out - ref))}")

    print("KERNEL_OK")
</pallas_src>

<mosaic_0001>
module attributes {stable_mosaic.version = 11 : i64} {
  func.func @_subcluster_attn_kernel(%arg0: memref<8x32xf32, #tpu.memory_space<vmem>>, %arg1: memref<33x128xf32, #tpu.memory_space<vmem>>, %arg2: memref<2x6x1x32xf32, #tpu.memory_space<vmem>>, %arg3: memref<6x8x8xf32, #tpu.memory_space<vmem>>, %arg4: memref<6x8x32xf32, #tpu.memory_space<vmem>>) attributes {dimension_semantics = [], scalar_prefetch = 0 : i64, scratch_operands = 0 : i64, tpu.core_type = #tpu.core_type<tc>} {
    %c0 = arith.constant 0 : index
    %c0_0 = arith.constant 0 : index
    %0 = vector.load %arg0[%c0, %c0_0] : memref<8x32xf32, #tpu.memory_space<vmem>>, vector<8x32xf32>
    %c0_1 = arith.constant 0 : index
    %c0_2 = arith.constant 0 : index
    %1 = vector.load %arg1[%c0_1, %c0_2] : memref<33x128xf32, #tpu.memory_space<vmem>>, vector<32x128xf32>
    %c32 = arith.constant 32 : index
    %c0_3 = arith.constant 0 : index
    %2 = vector.load %arg1[%c32, %c0_3] : memref<33x128xf32, #tpu.memory_space<vmem>>, vector<1x128xf32>
    %cst = arith.constant dense<0.000000e+00> : vector<8x128xf32>
    %3 = tpu.matmul %0, %1, %cst {dimension_numbers = #tpu.dot_dimension_numbers<[1], [0], [0], [1], [0, 0, 1, 1], [], []>} : vector<8x32xf32>, vector<32x128xf32>, vector<8x128xf32> -> vector<8x128xf32>
    %4 = vector.broadcast %2 : vector<1x128xf32> to vector<8x128xf32>
    %5 = arith.addf %3, %4 : vector<8x128xf32>
    %6 = vector.extract_strided_slice %5 {offsets = [0, 0], sizes = [8, 32], strides = [1, 1]} : vector<8x128xf32> to vector<8x32xf32>
    %7 = vector.extract_strided_slice %5 {offsets = [0, 32], sizes = [8, 32], strides = [1, 1]} : vector<8x128xf32> to vector<8x32xf32>
    %8 = vector.extract_strided_slice %5 {offsets = [0, 64], sizes = [8, 32], strides = [1, 1]} : vector<8x128xf32> to vector<8x32xf32>
    %9 = vector.extract_strided_slice %1 {offsets = [0, 96], sizes = [32, 32], strides = [1, 1]} : vector<32x128xf32> to vector<32x32xf32>
    %10 = vector.extract_strided_slice %2 {offsets = [0, 96], sizes = [1, 32], strides = [1, 1]} : vector<1x128xf32> to vector<1x32xf32>
    %cst_4 = arith.constant 0.176776692 : f32
    %11 = vector.broadcast %cst_4 : f32 to vector<8x32xf32>
    %12 = arith.mulf %6, %11 : vector<8x32xf32>
    %13 = tpu.transpose %7, [1, 0] : vector<8x32xf32> -> vector<32x8xf32>
    %cst_5 = arith.constant dense<0.000000e+00> : vector<8x8xf32>
    %14 = tpu.matmul %12, %13, %cst_5 {dimension_numbers = #tpu.dot_dimension_numbers<[1], [0], [0], [1], [0, 0, 1, 1], [], []>} : vector<8x32xf32>, vector<32x8xf32>, vector<8x8xf32> -> vector<8x8xf32>
    %15 = vector.shape_cast %14 : vector<8x8xf32> to vector<1x8x8xf32>
    %c0_6 = arith.constant 0 : index
    %c0_7 = arith.constant 0 : index
    %c0_8 = arith.constant 0 : index
    %16 = vector.load %arg3[%c0_6, %c0_7, %c0_8] : memref<6x8x8xf32, #tpu.memory_space<vmem>>, vector<6x8x8xf32>
    %17 = vector.broadcast %15 : vector<1x8x8xf32> to vector<6x8x8xf32>
    %18 = arith.addf %17, %16 : vector<6x8x8xf32>
    %cst_9 = arith.constant dense<0xFF800000> : vector<6x8xf32>
    %19 = vector.multi_reduction <maximumf>, %18, %cst_9 [2] : vector<6x8x8xf32> to vector<6x8xf32>
    %20 = vector.shape_cast %19 : vector<6x8xf32> to vector<6x8x1xf32>
    %21 = vector.broadcast %20 : vector<6x8x1xf32> to vector<6x8x8xf32>
    %22 = arith.subf %18, %21 : vector<6x8x8xf32>
    %23 = math.exp %22 : vector<6x8x8xf32>
    %24 = vector.shape_cast %23 : vector<6x8x8xf32> to vector<48x8xf32>
    %cst_10 = arith.constant dense<0.000000e+00> : vector<48xf32>
    %25 = vector.multi_reduction <add>, %24, %cst_10 [1] : vector<48x8xf32> to vector<48xf32>
    %26 = vector.shape_cast %25 : vector<48xf32> to vector<48x1xf32>
    %27 = tpu.reciprocal %26 : vector<48x1xf32> -> vector<48x1xf32>
    %cst_11 = arith.constant dense<0.000000e+00> : vector<48x32xf32>
    %28 = tpu.matmul %24, %8, %cst_11 {dimension_numbers = #tpu.dot_dimension_numbers<[1], [0], [0], [1], [0, 0, 1, 1], [], []>} : vector<48x8xf32>, vector<8x32xf32>, vector<48x32xf32> -> vector<48x32xf32>
    %29 = vector.broadcast %27 : vector<48x1xf32> to vector<48x32xf32>
    %30 = arith.mulf %28, %29 : vector<48x32xf32>
    %cst_12 = arith.constant dense<0.000000e+00> : vector<48x32xf32>
    %31 = tpu.matmul %30, %9, %cst_12 {dimension_numbers = #tpu.dot_dimension_numbers<[1], [0], [0], [1], [0, 0, 1, 1], [], []>} : vector<48x32xf32>, vector<32x32xf32>, vector<48x32xf32> -> vector<48x32xf32>
    %32 = vector.broadcast %10 : vector<1x32xf32> to vector<48x32xf32>
    %33 = arith.addf %31, %32 : vector<48x32xf32>
    %34 = vector.shape_cast %33 : vector<48x32xf32> to vector<6x8x32xf32>
    %35 = vector.shape_cast %0 : vector<8x32xf32> to vector<1x8x32xf32>
    %36 = vector.broadcast %35 : vector<1x8x32xf32> to vector<6x8x32xf32>
    %37 = arith.addf %34, %36 : vector<6x8x32xf32>
    %cst_13 = arith.constant dense<0.000000e+00> : vector<6x8xf32>
    %38 = vector.multi_reduction <add>, %37, %cst_13 [2] : vector<6x8x32xf32> to vector<6x8xf32>
    %39 = vector.shape_cast %38 : vector<6x8xf32> to vector<6x8x1xf32>
    %cst_14 = arith.constant 3.200000e+01 : f32
    %40 = vector.broadcast %cst_14 : f32 to vector<6x8x1xf32>
    %41 = arith.divf %39, %40 : vector<6x8x1xf32>
    %42 = vector.broadcast %41 : vector<6x8x1xf32> to vector<6x8x32xf32>
    %43 = arith.subf %37, %42 : vector<6x8x32xf32>
    %44 = arith.mulf %43, %43 : vector<6x8x32xf32>
    %cst_15 = arith.constant dense<0.000000e+00> : vector<6x8xf32>
    %45 = vector.multi_reduction <add>, %44, %cst_15 [2] : vector<6x8x32xf32> to vector<6x8xf32>
    %46 = vector.shape_cast %45 : vector<6x8xf32> to vector<6x8x1xf32>
    %cst_16 = arith.constant 3.200000e+01 : f32
    %47 = vector.broadcast %cst_16 : f32 to vector<6x8x1xf32>
    %48 = arith.divf %46, %47 : vector<6x8x1xf32>
    %cst_17 = arith.constant 9.99999996E-13 : f32
    %49 = vector.broadcast %cst_17 : f32 to vector<6x8x1xf32>
    %50 = arith.addf %48, %49 : vector<6x8x1xf32>
    %51 = math.rsqrt %50 : vector<6x8x1xf32>
    %52 = vector.broadcast %51 : vector<6x8x1xf32> to vector<6x8x32xf32>
    %53 = arith.mulf %43, %52 : vector<6x8x32xf32>
    %c0_18 = arith.constant 0 : index
    %c0_19 = arith.constant 0 : index
    %c0_20 = arith.constant 0 : index
    %c0_21 = arith.constant 0 : index
    %54 = vector.load %arg2[%c0_18, %c0_19, %c0_20, %c0_21] : memref<2x6x1x32xf32, #tpu.memory_space<vmem>>, vector<1x6x1x32xf32>
    %55 = vector.shape_cast %54 : vector<1x6x1x32xf32> to vector<6x1x32xf32>
    %c1 = arith.constant 1 : index
    %c0_22 = arith.constant 0 : index
    %c0_23 = arith.constant 0 : index
    %c0_24 = arith.constant 0 : index
    %56 = vector.load %arg2[%c1, %c0_22, %c0_23, %c0_24] : memref<2x6x1x32xf32, #tpu.memory_space<vmem>>, vector<1x6x1x32xf32>
    %57 = vector.shape_cast %56 : vector<1x6x1x32xf32> to vector<6x1x32xf32>
    %58 = vector.broadcast %55 : vector<6x1x32xf32> to vector<6x8x32xf32>
    %59 = arith.mulf %53, %58 : vector<6x8x32xf32>
    %60 = vector.broadcast %57 : vector<6x1x32xf32> to vector<6x8x32xf32>
    %61 = arith.addf %59, %60 : vector<6x8x32xf32>
    %c0_25 = arith.constant 0 : index
    %c0_26 = arith.constant 0 : index
    %c0_27 = arith.constant 0 : index
    %62 = vector.load %arg4[%c0_25, %c0_26, %c0_27] : memref<6x8x32xf32, #tpu.memory_space<vmem>>, vector<6x8x32xf32>
    tpu.vector_store %arg4[%c0_25, %c0_26, %c0_27], %61 {strides = array<i32>} : memref<6x8x32xf32, #tpu.memory_space<vmem>>, vector<6x8x32xf32>,
    return
  }
}

</mosaic_0001>

<bundles_post_ra>
// kernel: tpu_custom_call.1
= control target key start
LH: loop header
LB: loop body
LE: loop exit
PB: predicated region body
PF: predicated region fallthrough
CT: control target
= control target key end

     0   :  { %9 = vsyncpa [#allocation3], 0  ;;  %s1189_s0 = inlined_call_operand.hbm [shape: f32[8,32], index: 0, kind: input, shape index: {}]   ;;  %s1190_s1 = inlined_call_operand.hbm [shape: f32[33,128], index: 1, kind: input, shape index: {}]   ;;  %s1191_s2 = inlined_call_operand.hbm [shape: f32[2,6,1,32], index: 2, kind: input, shape index: {}]   ;;  %s1192_s3 = inlined_call_operand.hbm [shape: f32[6,8,8], index: 3, kind: input, shape index: {}]   ;;  %s1193_s4 = inlined_call_operand.hbm [shape: f32[6,8,32], index: 4, kind: output, shape index: {}]  }
   0x1   :  { %10 = vsyncpa [#allocation6], 0 }
   0x2   :  { %11 = vsyncpa [#allocation9], 0 }
   0x3   :  { %12 = vsyncpa [#allocation4], 0  ;;  %s1031_s15 = smov [#allocation5]  }
   0x4   :  { %s28_s16 = sshll.u32 %s1031_s15, 4  ;;  %s29_s16 = int_to_ptr.vmem [resolvable:$true] %s28_s16 }
   0x5   :  { %s931_s17 = scalar_lea.vmem %s29_s16, 640  ;;  %p936_p1 = scmp.lt.s32.totalorder %s29_s16, %s29_s16 }
   0x6   :  { %p932_p0 = scmp.ne.s32.totalorder %s29_s16, %s931_s17  ;;  %p937_p2 = scmp.lt.s32.totalorder %s931_s17, %s931_s17 }
   0x8   :  { %p938_p3 = por %p937_p2, %p936_p1 }
   0xa   :  { %p939_p4 = pnand %p938_p3, %p932_p0 }
   0xc   :  { %942 = shalt.err (!%p939_p4)
}
   0xd   :  { %s1032_s18 = smov 128   ;;  %s1033_s19 = smov 8  }
   0xe   :  { %34 = dma.hbm_to_vmem [thread:$0]  %s1190_s1, 640, %s29_s16, [#allocation6], %s1032_s18, %s1032_s18, %s1033_s19  }
   0xf   :  { %s1034_s22 = smov [#allocation2]   ;;  %s1035_s24 = smov [#allocation7]  }
  0x10   :  { %s19_s23 = sshll.u32 %s1034_s22, 4  ;;  %s40_s25 = sshll.u32 %s1035_s24, 4  ;;  %s20_s23 = int_to_ptr.vmem [resolvable:$true] %s19_s23  ;;  %s41_s25 = int_to_ptr.vmem [resolvable:$true] %s40_s25 }
  0x11   :  { %s951_s26 = scalar_lea.vmem %s20_s23, 128  ;;  %p956_p6 = scmp.lt.s32.totalorder %s20_s23, %s20_s23 }
  0x12   :  { %p952_p5 = scmp.ne.s32.totalorder %s20_s23, %s951_s26  ;;  %p957_p7 = scmp.lt.s32.totalorder %s951_s26, %s951_s26 }
  0x14   :  { %p958_p8 = por %p957_p7, %p956_p6 }
  0x16   :  { %p959_p9 = pnand %p958_p8, %p952_p5 }
  0x18   :  { %962 = shalt.err (!%p959_p9)
}
  0x19   :  { %22 = dma.hbm_to_vmem [thread:$0]  %s1189_s0, 128, %s20_s23, [#allocation3]  }
  0x1a   :  { %s971_s29 = scalar_lea.vmem %s41_s25, 192  ;;  %p976_p11 = scmp.lt.s32.totalorder %s41_s25, %s41_s25 }
  0x1b   :  { %p972_p10 = scmp.ne.s32.totalorder %s41_s25, %s971_s29  ;;  %p977_p12 = scmp.lt.s32.totalorder %s971_s29, %s971_s29 }
  0x1d   :  { %p978_p13 = por %p977_p12, %p976_p11 }
  0x1f   :  { %p979_p0 = pnand %p978_p13, %p972_p10 }
  0x21   :  { %982 = shalt.err (!%p979_p0)
}
  0x22   :  { %s1036_s1 = smov 16   ;;  %s1037_s30 = smov 1  }
  0x23   :  { %46 = dma.hbm_to_vmem [thread:$0]  %s1191_s2, 192, %s41_s25, [#allocation6], %s1036_s1, %s1036_s1, %s1037_s30  }
  0x24   :  { %s1038_s7 = smov [#allocation8]  }
  0x25   :  { %s52_s8 = sshll.u32 %s1038_s7, 4  ;;  %s53_s8 = int_to_ptr.vmem [resolvable:$true] %s52_s8 }
  0x26   :  { %s991_s9 = scalar_lea.vmem %s53_s8, 768  ;;  %p996_p2 = scmp.lt.s32.totalorder %s53_s8, %s53_s8 }
  0x27   :  { %p992_p1 = scmp.ne.s32.totalorder %s53_s8, %s991_s9  ;;  %p997_p3 = scmp.lt.s32.totalorder %s991_s9, %s991_s9 }
  0x29   :  { %p998_p4 = por %p997_p3, %p996_p2 }
  0x2b   :  { %p999_p5 = pnand %p998_p4, %p992_p1 }
  0x2d   :  { %1002 = shalt.err (!%p999_p5)
}
  0x2e   :  { %58 = dma.hbm_to_vmem [thread:$0]  %s1192_s3, 768, %s53_s8, [#allocation9], %s1032_s18, %s1032_s18, %s1033_s19  }
  0x2f   :  { %1023 = dma.done.wait [#allocation3], 128  }
  0x30   :  { %1024 = vsyncadd [#allocation3], 4294967168 }
  0x31   :  { %1025 = dma.done.wait [#allocation6], 832  }
  0x32   :  { %1026 = vsyncadd [#allocation6], 4294966464 }
  0x33   :  { %1027 = dma.done.wait [#allocation9], 768  }
  0x34   :  { %1028 = vsyncadd [#allocation9], 4294966528  ;;  %v1039_v0 = vmov 0.0   ;;  %vm1040_vm0 = vmmov 0   ;;  %v75_v1 = vld [vmem:[#allocation5 + $0x18] sm:$0xff]  ;;  %v1088_v2 = vld [vmem:[#allocation5 + $0x10] sm:$0xff] }
  0x35   :  { %821 = vmatprep.subr.mxu0 %v1039_v0  ;;  %829 = vmatprep.mubr.msk.f32.mxu0 %vm1040_vm0, %v1039_v0  ;;  %v1090_v3 = vld [vmem:[#allocation5 + $0x8] sm:$0xff]  ;;  %v1093_v4 = vld [vmem:[#allocation5] sm:$0xff]  ;;  %v1096_v5 = vld [vmem:[#allocation2] sm:$0xff]  ;;  %vm81_vm1 = vcmask 261120   ;;  %s1041_s2 = smov 96   ;;  %vm246_vm2 = vcmask 64512  }
  0x36   :  { %832 = vmatprep.subr.mxu1 %v1039_v0  ;;  %834 = vmatprep.mubr.msk.f32.mxu1 %vm1040_vm0, %v1039_v0  ;;  %v1101_v6 = vld [vmem:[#allocation5 + $0x20] ss:$0 sm:$0xff]  ;;  %v234_v13 = vld [vmem:[#allocation8] sm:$0xff]  ;;  %v236_v15 = vld [vmem:[#allocation8 + $0x10] sm:$0xff]  ;;  %s1042_s3 = smov 32   ;;  %s1043_s11 = smov 64  }
  0x37   :  { %822 = vmatpush3.msra.mxu0 %v75_v1  ;;  %v235_v12 = vld [vmem:[#allocation8 + $0x8] sm:$0xff]  ;;  %v237_v22 = vld [vmem:[#allocation8 + $0x18] sm:$0xff]  ;;  %v238_v25 = vld [vmem:[#allocation8 + $0x20] sm:$0xff]  ;;  %s1044_s12 = smov [#allocation10]  }
  0x38   :  { %823 = vmatprep.subr.mxu0 %v1039_v0  ;;  %v239_v28 = vld [vmem:[#allocation8 + $0x28] sm:$0xff]  ;;  %s755_s13 = sshll.u32 %s1044_s12, 4  ;;  %s756_s13 = int_to_ptr.vmem [resolvable:$true] %s755_s13 }
  0x39   :  { %824 = vmatpush3.msra.mxu0 %v1088_v2  ;;  %s1003_s14 = scalar_lea.vmem %s756_s13, 768  ;;  %p1008_p7 = scmp.lt.s32.totalorder %s756_s13, %s756_s13 }
  0x3a   :  { %825 = vmatprep.subr.mxu0 %v1039_v0  ;;  %p1004_p6 = scmp.ne.s32.totalorder %s756_s13, %s1003_s14  ;;  %p1009_p8 = scmp.lt.s32.totalorder %s1003_s14, %s1003_s14 }
  0x3b   :  { %826 = vmatpush3.msra.mxu0 %v1090_v3 }
  0x3c   :  { %827 = vmatprep.subr.mxu0 %v1039_v0  ;;  %p1010_p9 = por %p1009_p8, %p1008_p7 }
  0x3d   :  { %828 = vmatpush3.msra.mxu0 %v1093_v4 }
  0x3e   :  { %830 = vmatmul.mubr.msk.f32.vlgmr.msra.gmra.mxu0 %vm81_vm1, %v1096_v5  ;;  %p1011_p10 = pnand %p1010_p9, %p1004_p6 }
  0xfe   :  { %v151_v7 = vpop.f32.mrf.mxu0 }
  0xff   :  { %v152_v8 = vadd.f32 %v1101_v6, %v151_v7 }
 0x100   :  { %v831_v9 = vpop.f32.mrf.mxu0 }
 0x101   :  { %157 = vrot.lane.b32.xlu0 %v152_v8, %s1041_s2  ;;  %v155_v11 = vmul.f32 0.17677669, %v152_v8 }
 0x173   :  { %v158_v10 = vpop.permute.xlu0 %157 }
 0x174   :  { %833 = vmatpush3.xpose.msk.msra.mxu1 %vm81_vm1, %v158_v10 }
 0x177   :  { %835 = vmatmul.mubr.msk.f32.vlgmr.msra.gmra.mxu1 %vm81_vm1, %v155_v11 }
 0x237   :  { %v230_v14 = vpop.f32.mrf.mxu1 }
 0x238   :  { %v241_v16 = vadd.f32 %v235_v12, %v230_v14  ;;  %v240_v17 = vadd.f32 %v234_v13, %v230_v14  ;;  %v242_v21 = vadd.f32 %v236_v15, %v230_v14  ;;  %v243_v24 = vadd.f32 %v237_v22, %v230_v14 }
 0x239   :  { %v836_v18 = vpop.f32.mrf.mxu1  ;;  %v244_v27 = vadd.f32 %v238_v25, %v230_v14  ;;  %v245_v30 = vadd.f32 %v239_v28, %v230_v14 }
 0x23a   :  { %v250_v19 = vsel %vm246_vm2, %v241_v16, -inf  ;;  %v247_v20 = vsel %vm246_vm2, %v240_v17, -inf  ;;  %v253_v23 = vsel %vm246_vm2, %v242_v21, -inf  ;;  %v256_v26 = vsel %vm246_vm2, %v243_v24, -inf }
 0x23b   :  { %251 = vmax.xlane.f32.xlu1 %v250_v19  ;;  %248 = vmax.xlane.f32.xlu0 %v247_v20  ;;  %v259_v29 = vsel %vm246_vm2, %v244_v27, -inf  ;;  %v262_v31 = vsel %vm246_vm2, %v245_v30, -inf }
 0x23f   :  { %254 = vmax.xlane.f32.xlu1 %v253_v23 }
 0x243   :  { %257 = vmax.xlane.f32.xlu1 %v256_v26 }
 0x247   :  { %260 = vmax.xlane.f32.xlu1 %v259_v29 }
 0x24b   :  { %263 = vmax.xlane.f32.xlu1 %v262_v31 }
 0x251   :  { %439 = vrot.lane.b32.xlu0 %v75_v1, %s1042_s3 }
 0x25c   :  { %307 = vrot.lane.b32.xlu1 %v152_v8, %s1043_s11 }
 0x2c4   :  { %v252_v32 = vpop.xlane.xlu1 %251  ;;  %v249_v33 = vpop.xlane.xlu0 %248 }
 0x2c5   :  { %v266_v34 = vsub.f32 %v241_v16, %v252_v32  ;;  %v265_v35 = vsub.f32 %v240_v17, %v249_v33 }
 0x2c7   :  { %v273_v36 = vmul.f32 1.442695, %v266_v34  ;;  %v271_v37 = vmul.f32 1.442695, %v265_v35 }
 0x2c8   :  { %v255_v38 = vpop.xlane.xlu1 %254  ;;  %v440_v39 = vpop.permute.xlu0 %439 }
 0x2c9   :  { %887 = vpow2.f32 %v273_v36  ;;  %v267_v40 = vsub.f32 %v242_v21, %v255_v38  ;;  %848 = vmatprep.subr.mxu0 %v440_v39 }
 0x2ca   :  { %889 = vpow2.f32 %v271_v37  ;;  %849 = vmatpush3.msra.mxu0 %v440_v39 }
 0x2cb   :  { %v275_v41 = vmul.f32 1.442695, %v267_v40 }
 0x2cc   :  { %v258_v42 = vpop.xlane.xlu1 %257 }
 0x2cd   :  { %891 = vpow2.f32 %v275_v41  ;;  %v268_v43 = vsub.f32 %v243_v24, %v258_v42 }
 0x2cf   :  { %v277_v44 = vmul.f32 1.442695, %v268_v43 }
 0x2d0   :  { %v261_v45 = vpop.xlane.xlu1 %260 }
 0x2d1   :  { %893 = vpow2.f32 %v277_v44  ;;  %v269_v46 = vsub.f32 %v244_v27, %v261_v45 }
 0x2d3   :  { %v279_v47 = vmul.f32 1.442695, %v269_v46 }
 0x2d4   :  { %v264_v48 = vpop.xlane.xlu1 %263 }
 0x2d5   :  { %895 = vpow2.f32 %v279_v47  ;;  %v270_v49 = vsub.f32 %v245_v30, %v264_v48 }
 0x2d6   :  { %v888_v50 = vpop.eup %887 }
 0x2d7   :  { %v890_v51 = vpop.eup %889  ;;  %v281_v52 = vmul.f32 1.442695, %v270_v49  ;;  %v286_v53 = vsel %vm246_vm2, %v888_v50, 0.0 }
 0x2d8   :  { %839 = vmatprep.mubr.msk.f32.mxu1 %vm246_vm2, %v890_v51  ;;  %287 = vadd.xlane.f32.xlu1 %v286_v53  ;;  %v308_v54 = vpop.permute.xlu1 %307  ;;  %v283_v55 = vsel %vm246_vm2, %v890_v51, 0.0 }
 0x2d9   :  { %897 = vpow2.f32 %v281_v52  ;;  %284 = vadd.xlane.f32.xlu0 %v283_v55  ;;  %837 = vmatprep.subr.mxu1 %v308_v54 }
 0x2da   :  { %v892_v56 = vpop.eup %891  ;;  %838 = vmatpush3.msra.mxu1 %v308_v54 }
 0x2db   :  { %840 = vmatmul.mubr.msk.f32.vlgmr.msra.gmra.mxu1 %vm246_vm2, %v888_v50  ;;  %865 = vmatprep.subr.mxu1 %v440_v39  ;;  %v289_v60 = vsel %vm246_vm2, %v892_v56, 0.0 }
 0x2dc   :  { %842 = vmatprep.mubr.msk.f32.mxu1 %vm246_vm2, %v892_v56  ;;  %869 = vmatpush3.msra.mxu1 %v440_v39 }
 0x2de   :  { %v894_v57 = vpop.eup %893 }
 0x2df   :  { %843 = vmatmul.mubr.msk.f32.gmra.mxu1 %vm246_vm2, %v894_v57  ;;  %v292_v62 = vsel %vm246_vm2, %v894_v57, 0.0 }
 0x2e2   :  { %v896_v58 = vpop.eup %895 }
 0x2e3   :  { %845 = vmatprep.mubr.msk.f32.mxu1 %vm246_vm2, %v896_v58  ;;  %v295_v61 = vsel %vm246_vm2, %v896_v58, 0.0 }
 0x2e6   :  { %v898_v59 = vpop.eup %897 }
 0x2e7   :  { %846 = vmatmul.mubr.msk.f32.gmra.mxu1 %vm246_vm2, %v898_v59  ;;  %v298_v63 = vsel %vm246_vm2, %v898_v59, 0.0 }
 0x2e9   :  { %437 = vrot.lane.b32.xlu1 %v1088_v2, %s1042_s3 }
 0x2ef   :  { %435 = vrot.lane.b32.xlu0 %v1090_v3, %s1042_s3 }
 0x30e   :  { %290 = vadd.xlane.f32.xlu0 %v289_v60 }
 0x312   :  { %296 = vadd.xlane.f32.xlu0 %v295_v61 }
 0x316   :  { %293 = vadd.xlane.f32.xlu0 %v292_v62 }
 0x31a   :  { %299 = vadd.xlane.f32.xlu0 %v298_v63 }
 0x330   :  { %433 = vrot.lane.b32.xlu0 %v1093_v4, %s1042_s3 }
 0x334   :  { %446 = vrot.lane.b32.xlu0 %v1101_v6, %s1042_s3 }
 0x361   :  { %v288_v0 = vpop.xlane.xlu1 %287 }
 0x362   :  { %v285_v1 = vpop.xlane.xlu0 %284 }
 0x363   :  { %899 = vrcp.f32 %v285_v1 }
 0x365   :  { %v438_v2 = vpop.permute.xlu1 %437 }
 0x366   :  { %850 = vmatprep.subr.mxu0 %v438_v2  ;;  %866 = vmatprep.subr.mxu1 %v438_v2  ;;  %v436_v3 = vpop.permute.xlu0 %435 }
 0x367   :  { %851 = vmatpush3.msra.mxu0 %v438_v2  ;;  %870 = vmatpush3.msra.mxu1 %v438_v2 }
 0x368   :  { %852 = vmatprep.subr.mxu0 %v436_v3  ;;  %867 = vmatprep.subr.mxu1 %v436_v3 }
 0x369   :  { %853 = vmatpush3.msra.mxu0 %v436_v3  ;;  %871 = vmatpush3.msra.mxu1 %v436_v3 }
 0x370   :  { %v900_v6 = vpop.eup %899 }
 0x397   :  { %v291_v7 = vpop.xlane.xlu0 %290 }
 0x398   :  { %901 = vrcp.f32 %v291_v7 }
 0x399   :  { %903 = vrcp.f32 %v288_v0 }
 0x39b   :  { %v297_v4 = vpop.xlane.xlu0 %296  ;;  %v841_v8 = vpop.f32.mrf.mxu1 }
 0x39c   :  { %905 = vrcp.f32 %v297_v4 }
 0x39d   :  { %v394_v9 = vpop.f32.mrf.mxu1 }
 0x39e   :  { %v423_v10 = vmul.f32 %v900_v6, %v394_v9 }
 0x39f   :  { %v294_v11 = vpop.xlane.xlu0 %293  ;;  %v844_v12 = vpop.f32.mrf.mxu1 }
 0x3a0   :  { %907 = vrcp.f32 %v294_v11  ;;  %856 = vmatprep.mubr.msk.f32.mxu0 %vm81_vm1, %v423_v10 }
 0x3a1   :  { %v404_v14 = vpop.f32.mrf.mxu1 }
 0x3a3   :  { %v300_v13 = vpop.xlane.xlu0 %299 }
 0x3a4   :  { %909 = vrcp.f32 %v300_v13 }
 0x3a5   :  { %v902_v15 = vpop.eup %901 }
 0x3a6   :  { %v904_v16 = vpop.eup %903  ;;  %v425_v21 = vmul.f32 %v902_v15, %v404_v14 }
 0x3a7   :  { %v434_v17 = vpop.permute.xlu0 %433  ;;  %v847_v18 = vpop.f32.mrf.mxu1  ;;  %v424_v19 = vmul.f32 %v904_v16, %v841_v8 }
 0x3a8   :  { %854 = vmatprep.subr.mxu0 %v434_v17  ;;  %868 = vmatprep.subr.mxu1 %v434_v17 }
 0x3a9   :  { %v906_v20 = vpop.eup %905  ;;  %855 = vmatpush3.msra.mxu0 %v434_v17  ;;  %872 = vmatpush3.msra.mxu1 %v434_v17  ;;  %v414_v22 = vpop.f32.mrf.mxu1 }
 0x3aa   :  { %v427_v23 = vmul.f32 %v906_v20, %v414_v22  ;;  %857 = vmatmul.mubr.msk.f32.vlgmr.msra.gmra.mxu0 %vm81_vm1, %v424_v19 }
 0x3ab   :  { %859 = vmatprep.mubr.msk.f32.mxu0 %vm81_vm1, %v425_v21  ;;  %v447_v28 = vpop.permute.xlu0 %446 }
 0x3ac   :  { %862 = vmatprep.mubr.msk.f32.mxu1 %vm81_vm1, %v427_v23 }
 0x3ad   :  { %v908_v24 = vpop.eup %907 }
 0x3ae   :  { %v426_v25 = vmul.f32 %v908_v24, %v844_v12 }
 0x3b0   :  { %860 = vmatmul.mubr.msk.f32.gmra.mxu0 %vm81_vm1, %v426_v25 }
 0x3b1   :  { %v910_v26 = vpop.eup %909 }
 0x3b2   :  { %v428_v27 = vmul.f32 %v910_v26, %v847_v18 }
 0x3b4   :  { %863 = vmatmul.mubr.msk.f32.vlgmr.msra.gmra.mxu1 %vm81_vm1, %v428_v27 }
 0x46a   :  { %v858_v29 = vpop.f32.mrf.mxu0 }
 0x46b   :  { %v539_v30 = vadd.f32 %v858_v29, %v447_v28 }
 0x46c   :  { %v533_v31 = vpop.f32.mrf.mxu0 }
 0x46d   :  { %v534_v32 = vadd.f32 %v533_v31, %v447_v28  ;;  %v563_v33 = vadd.f32 %v539_v30, %v1096_v5 }
 0x46f   :  { %v571_v34 = vsel %vm81_vm1, %v563_v33, 0.0  ;;  %v562_v35 = vadd.f32 %v534_v32, %v1096_v5 }
 0x470   :  { %572 = vadd.xlane.f32.xlu1 %v571_v34  ;;  %v861_v36 = vpop.f32.mrf.mxu0 }
 0x471   :  { %v549_v37 = vadd.f32 %v861_v36, %v447_v28  ;;  %v568_v38 = vsel %vm81_vm1, %v562_v35, 0.0 }
 0x472   :  { %v543_v39 = vpop.f32.mrf.mxu0  ;;  %569 = vadd.xlane.f32.xlu0 %v568_v38  ;;  %v786_v38 = vld [vmem:[#allocation7 + $0x1] ss:$0 sm:$0xff] }
 0x473   :  { %v544_v40 = vadd.f32 %v543_v39, %v447_v28  ;;  %v565_v41 = vadd.f32 %v549_v37, %v1096_v5 }
 0x474   :  { %v864_v42 = vpop.f32.mrf.mxu1 }
 0x475   :  { %v559_v43 = vadd.f32 %v864_v42, %v447_v28  ;;  %v577_v44 = vsel %vm81_vm1, %v565_v41, 0.0  ;;  %v564_v45 = vadd.f32 %v544_v40, %v1096_v5  ;;  %v785_v42 = vld [vmem:[#allocation7] ss:$0 sm:$0xff] }
 0x476   :  { %v553_v46 = vpop.f32.mrf.mxu1  ;;  %578 = vadd.xlane.f32.xlu0 %v577_v44 }
 0x477   :  { %v554_v47 = vadd.f32 %v553_v46, %v447_v28  ;;  %v574_v48 = vsel %vm81_vm1, %v564_v45, 0.0  ;;  %v567_v50 = vadd.f32 %v559_v43, %v1096_v5 }
 0x479   :  { %v566_v49 = vadd.f32 %v554_v47, %v1096_v5  ;;  %v583_v52 = vsel %vm81_vm1, %v567_v50, 0.0 }
 0x47a   :  { %575 = vadd.xlane.f32.xlu0 %v574_v48 }
 0x47b   :  { %v580_v51 = vsel %vm81_vm1, %v566_v49, 0.0 }
 0x47c   :  { %581 = vadd.xlane.f32.xlu1 %v580_v51 }
 0x47e   :  { %584 = vadd.xlane.f32.xlu0 %v583_v52  ;;  %v794_v52 = vld [vmem:[#allocation7 + $0x9] ss:$0 sm:$0xff] }
 0x4f9   :  { %v573_v53 = vpop.xlane.xlu1 %572 }
 0x4fa   :  { %v588_v54 = vmul.f32 0.03125, %v573_v53 }
 0x4fb   :  { %v570_v55 = vpop.xlane.xlu0 %569 }
 0x4fc   :  { %v594_v56 = vsub.f32 %v563_v33, %v588_v54  ;;  %v587_v57 = vmul.f32 0.03125, %v570_v55  ;;  %v787_v55 = vld [vmem:[#allocation7 + $0x2] ss:$0 sm:$0xff] }
 0x4fe   :  { %v593_v58 = vsub.f32 %v562_v35, %v587_v57  ;;  %v600_v59 = vmul.f32 %v594_v56, %v594_v56 }
 0x4ff   :  { %v579_v60 = vpop.xlane.xlu0 %578 }
 0x500   :  { %v590_v61 = vmul.f32 0.03125, %v579_v60  ;;  %v608_v62 = vsel %vm81_vm1, %v600_v59, 0.0  ;;  %v599_v63 = vmul.f32 %v593_v58, %v593_v58 }
 0x501   :  { %609 = vadd.xlane.f32.xlu0 %v608_v62 }
 0x502   :  { %v1152_v5 = vsub.f32 %v565_v41, %v590_v61  ;;  %v605_v0 = vsel %vm81_vm1, %v599_v63, 0.0  ;;  %v792_v41 = vld [vmem:[#allocation7 + $0x7] ss:$0 sm:$0xff]  ;;  %v789_v61 = vld [vmem:[#allocation7 + $0x4] ss:$0 sm:$0xff] }
 0x503   :  { %606 = vadd.xlane.f32.xlu1 %v605_v0  ;;  %v576_v1 = vpop.xlane.xlu0 %575 }
 0x504   :  { %v589_v2 = vmul.f32 0.03125, %v576_v1  ;;  %v602_v3 = vmul.f32 %v1152_v5, %v1152_v5  ;;  %v795_v1 = vld [vmem:[#allocation7 + $0xa] ss:$0 sm:$0xff] }
 0x505   :  { %v582_v7 = vpop.xlane.xlu1 %581 }
 0x506   :  { %v1157_v4 = vsub.f32 %v564_v45, %v589_v2  ;;  %v591_v8 = vmul.f32 0.03125, %v582_v7  ;;  %v614_v6 = vsel %vm81_vm1, %v602_v3, 0.0  ;;  %v791_v45 = vld [vmem:[#allocation7 + $0x6] ss:$0 sm:$0xff]  ;;  %v796_v7 = vld [vmem:[#allocation7 + $0xb] ss:$0 sm:$0xff] }
 0x507   :  { %615 = vadd.xlane.f32.xlu0 %v614_v6  ;;  %v585_v9 = vpop.xlane.xlu0 %584 }
 0x508   :  { %v1160_v10 = vsub.f32 %v566_v49, %v591_v8  ;;  %v592_v11 = vmul.f32 0.03125, %v585_v9  ;;  %v601_v12 = vmul.f32 %v1157_v4, %v1157_v4  ;;  %v788_v49 = vld [vmem:[#allocation7 + $0x3] ss:$0 sm:$0xff] }
 0x50a   :  { %v1164_v13 = vsub.f32 %v567_v50, %v592_v11  ;;  %v611_v14 = vsel %vm81_vm1, %v601_v12, 0.0  ;;  %v603_v15 = vmul.f32 %v1160_v10, %v1160_v10 }
 0x50b   :  { %612 = vadd.xlane.f32.xlu1 %v611_v14 }
 0x50c   :  { %v604_v16 = vmul.f32 %v1164_v13, %v1164_v13  ;;  %v617_v17 = vsel %vm81_vm1, %v603_v15, 0.0 }
 0x50e   :  { %v620_v18 = vsel %vm81_vm1, %v604_v16, 0.0 }
 0x50f   :  { %618 = vadd.xlane.f32.xlu1 %v617_v17  ;;  %621 = vadd.xlane.f32.xlu0 %v620_v18 }
 0x58a   :  { %v610_v19 = vpop.xlane.xlu0 %609 }
 0x58b   :  { %v624_v20 = vmul.f32 0.03125, %v610_v19 }
 0x58c   :  { %v607_v21 = vpop.xlane.xlu1 %606 }
 0x58d   :  { %v630_v22 = vadd.f32 1e-12, %v624_v20  ;;  %v623_v23 = vmul.f32 0.03125, %v607_v21 }
 0x58f   :  { %911 = vrsqrt.f32 %v630_v22  ;;  %v629_v24 = vadd.f32 1e-12, %v623_v23 }
 0x590   :  { %v616_v25 = vpop.xlane.xlu0 %615 }
 0x591   :  { %913 = vrsqrt.f32 %v629_v24  ;;  %v626_v26 = vmul.f32 0.03125, %v616_v25 }
 0x593   :  { %v632_v27 = vadd.f32 1e-12, %v626_v26 }
 0x594   :  { %v613_v28 = vpop.xlane.xlu1 %612 }
 0x595   :  { %915 = vrsqrt.f32 %v632_v27  ;;  %v625_v29 = vmul.f32 0.03125, %v613_v28 }
 0x597   :  { %v631_v30 = vadd.f32 1e-12, %v625_v29 }
 0x598   :  { %v619_v31 = vpop.xlane.xlu1 %618  ;;  %v622_v32 = vpop.xlane.xlu0 %621 }
 0x599   :  { %917 = vrsqrt.f32 %v631_v30  ;;  %v627_v33 = vmul.f32 0.03125, %v619_v31  ;;  %v628_v34 = vmul.f32 0.03125, %v622_v32 }
 0x59b   :  { %v633_v35 = vadd.f32 1e-12, %v627_v33  ;;  %v634_v36 = vadd.f32 1e-12, %v628_v34 }
 0x59c   :  { %v912_v37 = vpop.eup %911 }
 0x59d   :  { %v642_v39 = vmul.f32 %v912_v37, %v594_v56  ;;  %919 = vrsqrt.f32 %v633_v35 }
 0x59e   :  { %v914_v40 = vpop.eup %913  ;;  %921 = vrsqrt.f32 %v634_v36 }
 0x59f   :  { %v697_v43 = vmul.f32 %v786_v38, %v642_v39  ;;  %v641_v44 = vmul.f32 %v914_v40, %v593_v58  ;;  %v793_v58 = vld [vmem:[#allocation7 + $0x8] ss:$0 sm:$0xff] }
 0x5a1   :  { %v739_v46 = vadd.f32 %v792_v41, %v697_v43  ;;  %v696_v47 = vmul.f32 %v785_v42, %v641_v44 }
 0x5a2   :  { %v916_v48 = vpop.eup %915 }
 0x5a3   :  { %745 = vst.msk [vmem:[#allocation10 + $0x8] sm:$0xff] %vm81_vm1, %v739_v46  ;;  %v738_v50 = vadd.f32 %v791_v45, %v696_v47  ;;  %v644_v51 = vmul.f32 %v916_v48, %v1152_v5  ;;  %v790_v5 = vld [vmem:[#allocation7 + $0x5] ss:$0 sm:$0xff] }
 0x5a5   :  { %744 = vst.msk [vmem:[#allocation10] sm:$0xff] %vm81_vm1, %v738_v50  ;;  %v699_v53 = vmul.f32 %v788_v49, %v644_v51 }
 0x5a6   :  { %v918_v54 = vpop.eup %917 }
 0x5a7   :  { %v741_v56 = vadd.f32 %v794_v52, %v699_v53  ;;  %v643_v57 = vmul.f32 %v918_v54, %v1157_v4 }
 0x5a9   :  { %747 = vst.msk [vmem:[#allocation10 + $0x18] sm:$0xff] %vm81_vm1, %v741_v56  ;;  %v698_v59 = vmul.f32 %v787_v55, %v643_v57 }
 0x5aa   :  { %v920_v60 = vpop.eup %919 }
 0x5ab   :  { %v922_v62 = vpop.eup %921  ;;  %v740_v63 = vadd.f32 %v793_v58, %v698_v59  ;;  %v645_v0 = vmul.f32 %v920_v60, %v1160_v10 }
 0x5ac   :  { %v646_v2 = vmul.f32 %v922_v62, %v1164_v13 }
 0x5ad   :  { %746 = vst.msk [vmem:[#allocation10 + $0x10] sm:$0xff] %vm81_vm1, %v740_v63  ;;  %v700_v3 = vmul.f32 %v789_v61, %v645_v0 }
 0x5ae   :  { %v701_v4 = vmul.f32 %v790_v5, %v646_v2 }
 0x5af   :  { %v742_v8 = vadd.f32 %v795_v1, %v700_v3 }
 0x5b0   :  { %v743_v6 = vadd.f32 %v796_v7, %v701_v4 }
 0x5b1   :  { %748 = vst.msk [vmem:[#allocation10 + $0x20] sm:$0xff] %vm81_vm1, %v742_v8 }
 0x5b2   :  { %749 = vst.msk [vmem:[#allocation10 + $0x28] sm:$0xff] %vm81_vm1, %v743_v6 }
 0x5b3   :  { %1014 = shalt.err (!%p1011_p10)
}
 0x5b4   :  { %761 = dma.vmem_to_hbm [thread:$0]  %s756_s13, 768, %s1193_s4, [#allocation4], %s1032_s18, %s1032_s18, %s1033_s19  }
 0x5b5   :  { %1029 = dma.done.wait [#allocation4], 768  }
 0x5b6   :  { %1030 = vsyncadd [#allocation4], 4294966528 }
 0x5b7   :  { %765 = vsyncpa [#allocation3], 1 }
 0x5b8   :  { %766 = vsyncpa [#allocation6], 1 }
 0x5b9   :  { %767 = vsyncpa [#allocation9], 1 }
 0x5ba   :  { %768 = vsyncpa [#allocation4], 1 }

</bundles_post_ra>
